<compile_context>
chip_gen: v6e
topology: v6e:2x2x1
jax: 0.10.0
libtpu: 0.0.40
codegen_flags: <defaults>
</compile_context>

<pallas_src>
import jax
import jax.numpy as jnp
from jax.experimental import pallas as pl
from jax.experimental.pallas import tpu as pltpu

# ---------------- model configuration (small, deterministic) ----------------
NUM_CLASSES = 4
IN_CH = 3            # image channels fed to the (proxy) backbone
SEG_CH = 32          # ASPP in_channels  (matches ASPP(in_channels=32, ...))
ASPP_CH = 32         # ASPP out_channels
IMG_H = IMG_W = 16   # input image spatial size
FEAT_H = FEAT_W = 8  # seg-feature spatial size (proxy backbone stride 2)
PAD = 6              # only the dilation-6 branch needs a halo (see fold_params)
OUT_PAD = 128        # final-conv out channels zero-padded to one full lane
BN_EPS = 1e-5

# 3x3 tap indices of the dilation-6 branch, excluding the centre tap
# (centre taps of every dilated branch are folded into one 1x1 weight).
OFF_TAPS = tuple((ky, kx) for ky in range(3) for kx in range(3)
                 if not (ky == 1 and kx == 1))


# ----------------------------- Pallas kernel --------------------------------
def aspp_head_kernel(xpad_ref, wc_ref, wd_ref, wg_ref, bias_ref,
                     wf_ref, bf_ref, up_ref, out_ref):
    """Folded ASPP -> project(BN,ReLU) -> final 1x1 conv -> fused 2x bilinear
    upsample, for one batch element.

    xpad_ref : (1, H+2*PAD, W+2*PAD, Cin) f32  zero-padded NHWC features
    wc_ref   : (Cin, Cout) bf16   combined centre weight of branches 1-4,
                                  folded through the projection 1x1 + BN scale
    wd_ref   : (8, Cin, Cout) bf16  folded non-centre taps of the dilation-6 conv
    wg_ref   : (Cin, Cout) f32    folded global-average-pool branch
    bias_ref : (1, Cout)  f32     folded BatchNorm bias
    wf_ref   : (Cout, OUT_PAD) f32  final 1x1 conv, zero-padded to 128 lanes
    bf_ref   : (1, OUT_PAD)   f32
    up_ref   : (IMG_H*IMG_W, H*W) f32  kron(U, U) bilinear-upsample matrix
    out_ref  : (1, IMG_H*IMG_W, OUT_PAD)
    """
    H, W = FEAT_H, FEAT_W
    Cin = wc_ref.shape[0]

    def window(dy, dx):
        # static shifted HxW window of the PAD-padded feature map, flattened
        w = xpad_ref[0, pl.ds(PAD + dy, H), pl.ds(PAD + dx, W), :]
        return w.reshape(H * W, Cin)

    xc = window(0, 0)                                       # (H*W, Cin) f32

    # centre taps of all four conv branches, folded into one matmul
    acc = jnp.dot(xc.astype(jnp.bfloat16), wc_ref[...],
                  preferred_element_type=jnp.float32)       # (H*W, Cout)

    # non-centre taps of the dilation-6 branch (dilation-12/18 non-centre taps
    # read only zero padding at H=W=8 and were dropped exactly — see fold_params)
    for t, (ky, kx) in enumerate(OFF_TAPS):
        acc = acc + jnp.dot(
            window((ky - 1) * 6, (kx - 1) * 6).astype(jnp.bfloat16),
            wd_ref[t],
            preferred_element_type=jnp.float32)

    # global-average-pool branch (1x1 map upsampled with align_corners=True is
    # a pure broadcast) + folded BatchNorm bias, added as one (1, Cout) row
    gap = jnp.mean(xc, axis=0, keepdims=True)               # (1, Cin)
    row = jnp.dot(gap, wg_ref[...],
                  preferred_element_type=jnp.float32) + bias_ref[...]
    acc = jnp.maximum(acc + row, 0.0)                       # projection ReLU

    # final 1x1 conv into a lane-dense 128-wide slab, then fused 2x bilinear
    # (align_corners=False) upsample as a single matmul with kron(U, U)
    y = jnp.dot(acc, wf_ref[...],
                preferred_element_type=jnp.float32) + bf_ref[...]   # (64, 128)
    y_up = jnp.dot(up_ref[...], y, preferred_element_type=jnp.float32)
    out_ref[0] = y_up.astype(out_ref.dtype)                 # (256, 128)


# ------------------------------ wrapper --------------------------------------
def aspp_head(seg_nhwc, kparams):
    """seg_nhwc: (N, FEAT_H, FEAT_W, SEG_CH) f32 -> (N, IMG_H*IMG_W, OUT_PAD)."""
    N, H, W, Cin = seg_nhwc.shape
    xpad = jnp.pad(seg_nhwc, ((0, 0), (PAD, PAD), (PAD, PAD), (0, 0)))
    Hp, Wp = H + 2 * PAD, W + 2 * PAD

    wc, wd, wg, bias, wf, bf, up = kparams
    full = lambda a: pl.BlockSpec(a.shape, lambda b: (0,) * a.ndim)

    return pl.pallas_call(
        aspp_head_kernel,
        out_shape=jax.ShapeDtypeStruct((N, IMG_H * IMG_W, OUT_PAD), jnp.float32),
        grid_spec=pltpu.PrefetchScalarGridSpec(
            num_scalar_prefetch=0,
            grid=(N,),
            in_specs=[
                pl.BlockSpec((1, Hp, Wp, Cin), lambda b: (b, 0, 0, 0)),
                full(wc), full(wd), full(wg), full(bias),
                full(wf), full(bf), full(up),
            ],
            out_specs=pl.BlockSpec((1, IMG_H * IMG_W, OUT_PAD),
                                   lambda b: (b, 0, 0)),
        ),
        compiler_params=pltpu.CompilerParams(
            dimension_semantics=("parallel",)),
    )(xpad, wc, wd, wg, bias, wf, bf, up)


# -------------------- parameters + host-side algebraic folding ---------------
def init_params(key):
    ks = jax.random.split(key, 12)
    s = 0.1
    w1 = s * jax.random.normal(ks[0], (SEG_CH, ASPP_CH), jnp.float32)
    w2 = s * jax.random.normal(ks[1], (3, 3, SEG_CH, ASPP_CH), jnp.float32)
    w3 = s * jax.random.normal(ks[2], (3, 3, SEG_CH, ASPP_CH), jnp.float32)
    w4 = s * jax.random.normal(ks[3], (3, 3, SEG_CH, ASPP_CH), jnp.float32)
    wg = s * jax.random.normal(ks[4], (SEG_CH, ASPP_CH), jnp.float32)
    wp = s * jax.random.normal(ks[5], (5 * ASPP_CH, ASPP_CH), jnp.float32)
    # BatchNorm2d (eval mode) parameters, folded into scale / bias
    gamma = 1.0 + 0.05 * jax.random.normal(ks[6], (ASPP_CH,), jnp.float32)
    beta = 0.05 * jax.random.normal(ks[7], (ASPP_CH,), jnp.float32)
    rmean = 0.05 * jax.random.normal(ks[8], (ASPP_CH,), jnp.float32)
    rvar = jnp.abs(1.0 + 0.05 * jax.random.normal(ks[9], (ASPP_CH,), jnp.float32))
    bn_scale = gamma / jnp.sqrt(rvar + BN_EPS)               # (C,)
    bn_bias = beta - rmean * bn_scale                        # (C,)
    wf = s * jax.random.normal(ks[10], (ASPP_CH, NUM_CLASSES), jnp.float32)
    bf = s * jax.random.normal(ks[11], (NUM_CLASSES,), jnp.float32)
    raw = (w1, w2, w3, w4, wg, wp, bn_scale, bn_bias, wf, bf)
    # proxy backbone stem (stand-in for the YOLOv5 yaml model), OIHW
    stem_w = s * jax.random.normal(jax.random.fold_in(key, 99),
                                   (SEG_CH, IN_CH, 3, 3), jnp.float32)
    return raw, stem_w


def fold_params(raw):
    """Host-side, exact algebraic folding (valid for FEAT_H = FEAT_W = 8):
      * concat + projection 1x1 + BN scale folded into each branch weight
        (proj = sum_i branch_i @ wp_i),
      * non-centre taps of the dilation-12/18 branches read only zero padding
        on an 8x8 map, so those branches collapse to their centre 1x1 taps,
      * final conv weight/bias zero-padded to 128 output lanes,
      * 2x align_corners=False bilinear upsample expressed as kron(U, U).
    """
    (w1, w2, w3, w4, wg, wp, bn_scale, bn_bias, wf, bf) = raw
    C = ASPP_CH
    wp1, wp2, wp3, wp4, wp5 = (wp[i * C:(i + 1) * C] for i in range(5))
    sc = bn_scale[None, :]                                   # (1, C)

    wc = (w1 @ wp1 + w2[1, 1] @ wp2 + w3[1, 1] @ wp3 + w4[1, 1] @ wp4) * sc
    wd = jnp.stack([(w2[ky, kx] @ wp2) * sc for (ky, kx) in OFF_TAPS])
    wg_f = (wg @ wp5) * sc
    bias = bn_bias[None, :]

    wf_pad = jnp.zeros((C, OUT_PAD), jnp.float32).at[:, :NUM_CLASSES].set(wf)
    bf_pad = jnp.zeros((1, OUT_PAD), jnp.float32).at[0, :NUM_CLASSES].set(bf)

    # separable half-pixel (align_corners=False) bilinear 8 -> 16 matrix
    u = jax.image.resize(jnp.eye(FEAT_H, dtype=jnp.float32),
                         (IMG_H, FEAT_H), method="bilinear")
    up = jnp.kron(u, u)                                      # (256, 64)

    return (wc.astype(jnp.bfloat16), wd.astype(jnp.bfloat16),
            wg_f.astype(jnp.float32), bias.astype(jnp.float32),
            wf_pad, bf_pad, up.astype(jnp.float32))


# ------------------------------ full forward ---------------------------------
def model_forward(x_nchw, kparams, stem_w):
    # TODO(synk): the YOLOv5 backbone (`Model(cfg='yolov5s-seg.yaml')`) is an
    # external yaml-defined network with no standalone Pallas equivalent; it is
    # replaced by a deterministic stride-2 conv stem producing the 32-channel
    # segmentation features consumed by the ASPP head.
    seg = jax.lax.conv_general_dilated(
        x_nchw, stem_w, window_strides=(2, 2), padding="SAME",
        dimension_numbers=("NCHW", "OIHW", "NCHW"))
    seg = jnp.maximum(seg, 0.0)                              # (N, 32, 8, 8)
    seg_nhwc = jnp.transpose(seg, (0, 2, 3, 1))              # -> NHWC

    slab = aspp_head(seg_nhwc, kparams)                      # (N, 256, 128)
    out = slab[:, :, :NUM_CLASSES].reshape(-1, IMG_H, IMG_W, NUM_CLASSES)
    return jnp.transpose(out, (0, 3, 1, 2))                  # back to NCHW


if __name__ == "__main__":
    key = jax.random.PRNGKey(0)
    k_x, k_p = jax.random.split(key)
    x = jax.random.normal(k_x, (2, IN_CH, IMG_H, IMG_W), jnp.float32)  # NCHW
    raw_params, stem_w = init_params(k_p)
    kparams = fold_params(raw_params)    # fold once, host-side

    fwd = jax.jit(model_forward)
    out = fwd(x, kparams, stem_w)
    out = jax.block_until_ready(out)
    assert out.shape == (2, NUM_CLASSES, IMG_H, IMG_W), out.shape
    assert bool(jnp.all(jnp.isfinite(out)))
    print("KERNEL_OK")
</pallas_src>

<mosaic_0001>
module attributes {stable_mosaic.version = 11 : i64} {
  func.func @aspp_head_kernel(%arg0: i32, %arg1: memref<1x20x20x32xf32, #tpu.memory_space<vmem>>, %arg2: memref<32x32xbf16, #tpu.memory_space<vmem>>, %arg3: memref<8x32x32xbf16, #tpu.memory_space<vmem>>, %arg4: memref<32x32xf32, #tpu.memory_space<vmem>>, %arg5: memref<1x32xf32, #tpu.memory_space<vmem>>, %arg6: memref<32x128xf32, #tpu.memory_space<vmem>>, %arg7: memref<1x128xf32, #tpu.memory_space<vmem>>, %arg8: memref<256x64xf32, #tpu.memory_space<vmem>>, %arg9: memref<1x256x128xf32, #tpu.memory_space<vmem>>) attributes {dimension_semantics = [#tpu.dimension_semantics<parallel>], iteration_bounds = array<i64: 2>, scalar_prefetch = 0 : i64, scratch_operands = 0 : i64, tpu.core_type = #tpu.core_type<tc>, window_params = [{transform_indices = @transform_0, window_bounds = array<i64: 1, 20, 20, 32>}, {pipeline_mode = #tpu.pipeline_mode<synchronous>, transform_indices = @transform_1, window_bounds = array<i64: 32, 32>}, {pipeline_mode = #tpu.pipeline_mode<synchronous>, transform_indices = @transform_2, window_bounds = array<i64: 8, 32, 32>}, {pipeline_mode = #tpu.pipeline_mode<synchronous>, transform_indices = @transform_3, window_bounds = array<i64: 32, 32>}, {pipeline_mode = #tpu.pipeline_mode<synchronous>, transform_indices = @transform_4, window_bounds = array<i64: 1, 32>}, {pipeline_mode = #tpu.pipeline_mode<synchronous>, transform_indices = @transform_5, window_bounds = array<i64: 32, 128>}, {pipeline_mode = #tpu.pipeline_mode<synchronous>, transform_indices = @transform_6, window_bounds = array<i64: 1, 128>}, {pipeline_mode = #tpu.pipeline_mode<synchronous>, transform_indices = @transform_7, window_bounds = array<i64: 256, 64>}, {transform_indices = @transform_8, window_bounds = array<i64: 1, 256, 128>}]} {
    %c0 = arith.constant 0 : index
    %c6 = arith.constant 6 : index
    %c6_0 = arith.constant 6 : index
    %c0_1 = arith.constant 0 : index
    %0 = vector.load %arg1[%c0, %c6, %c6_0, %c0_1] : memref<1x20x20x32xf32, #tpu.memory_space<vmem>>, vector<1x8x8x32xf32>
    %1 = vector.shape_cast %0 : vector<1x8x8x32xf32> to vector<8x8x32xf32>
    %2 = vector.shape_cast %1 : vector<8x8x32xf32> to vector<64x32xf32>
    %3 = arith.truncf %2 : vector<64x32xf32> to vector<64x32xbf16>
    %c0_2 = arith.constant 0 : index
    %c0_3 = arith.constant 0 : index
    %4 = vector.load %arg2[%c0_2, %c0_3] : memref<32x32xbf16, #tpu.memory_space<vmem>>, vector<32x32xbf16>
    %cst = arith.constant dense<0.000000e+00> : vector<64x32xf32>
    %5 = tpu.matmul %3, %4, %cst {dimension_numbers = #tpu.dot_dimension_numbers<[1], [0], [0], [1], [0, 0, 1, 1], [], []>} : vector<64x32xbf16>, vector<32x32xbf16>, vector<64x32xf32> -> vector<64x32xf32>
    %c0_4 = arith.constant 0 : index
    %c0_5 = arith.constant 0 : index
    %c0_6 = arith.constant 0 : index
    %c0_7 = arith.constant 0 : index
    %6 = vector.load %arg1[%c0_4, %c0_5, %c0_6, %c0_7] : memref<1x20x20x32xf32, #tpu.memory_space<vmem>>, vector<1x8x8x32xf32>
    %7 = vector.shape_cast %6 : vector<1x8x8x32xf32> to vector<8x8x32xf32>
    %8 = vector.shape_cast %7 : vector<8x8x32xf32> to vector<64x32xf32>
    %9 = arith.truncf %8 : vector<64x32xf32> to vector<64x32xbf16>
    %c0_8 = arith.constant 0 : index
    %c0_9 = arith.constant 0 : index
    %c0_10 = arith.constant 0 : index
    %10 = vector.load %arg3[%c0_8, %c0_9, %c0_10] : memref<8x32x32xbf16, #tpu.memory_space<vmem>>, vector<1x32x32xbf16>
    %11 = vector.shape_cast %10 : vector<1x32x32xbf16> to vector<32x32xbf16>
    %cst_11 = arith.constant dense<0.000000e+00> : vector<64x32xf32>
    %12 = tpu.matmul %9, %11, %cst_11 {dimension_numbers = #tpu.dot_dimension_numbers<[1], [0], [0], [1], [0, 0, 1, 1], [], []>} : vector<64x32xbf16>, vector<32x32xbf16>, vector<64x32xf32> -> vector<64x32xf32>
    %13 = arith.addf %5, %12 : vector<64x32xf32>
    %c0_12 = arith.constant 0 : index
    %c0_13 = arith.constant 0 : index
    %c6_14 = arith.constant 6 : index
    %c0_15 = arith.constant 0 : index
    %14 = vector.load %arg1[%c0_12, %c0_13, %c6_14, %c0_15] : memref<1x20x20x32xf32, #tpu.memory_space<vmem>>, vector<1x8x8x32xf32>
    %15 = vector.shape_cast %14 : vector<1x8x8x32xf32> to vector<8x8x32xf32>
    %16 = vector.shape_cast %15 : vector<8x8x32xf32> to vector<64x32xf32>
    %17 = arith.truncf %16 : vector<64x32xf32> to vector<64x32xbf16>
    %c1 = arith.constant 1 : index
    %c0_16 = arith.constant 0 : index
    %c0_17 = arith.constant 0 : index
    %18 = vector.load %arg3[%c1, %c0_16, %c0_17] : memref<8x32x32xbf16, #tpu.memory_space<vmem>>, vector<1x32x32xbf16>
    %19 = vector.shape_cast %18 : vector<1x32x32xbf16> to vector<32x32xbf16>
    %cst_18 = arith.constant dense<0.000000e+00> : vector<64x32xf32>
    %20 = tpu.matmul %17, %19, %cst_18 {dimension_numbers = #tpu.dot_dimension_numbers<[1], [0], [0], [1], [0, 0, 1, 1], [], []>} : vector<64x32xbf16>, vector<32x32xbf16>, vector<64x32xf32> -> vector<64x32xf32>
    %21 = arith.addf %13, %20 : vector<64x32xf32>
    %c0_19 = arith.constant 0 : index
    %c0_20 = arith.constant 0 : index
    %c12 = arith.constant 12 : index
    %c0_21 = arith.constant 0 : index
    %22 = vector.load %arg1[%c0_19, %c0_20, %c12, %c0_21] : memref<1x20x20x32xf32, #tpu.memory_space<vmem>>, vector<1x8x8x32xf32>
    %23 = vector.shape_cast %22 : vector<1x8x8x32xf32> to vector<8x8x32xf32>
    %24 = vector.shape_cast %23 : vector<8x8x32xf32> to vector<64x32xf32>
    %25 = arith.truncf %24 : vector<64x32xf32> to vector<64x32xbf16>
    %c2 = arith.constant 2 : index
    %c0_22 = arith.constant 0 : index
    %c0_23 = arith.constant 0 : index
    %26 = vector.load %arg3[%c2, %c0_22, %c0_23] : memref<8x32x32xbf16, #tpu.memory_space<vmem>>, vector<1x32x32xbf16>
    %27 = vector.shape_cast %26 : vector<1x32x32xbf16> to vector<32x32xbf16>
    %cst_24 = arith.constant dense<0.000000e+00> : vector<64x32xf32>
    %28 = tpu.matmul %25, %27, %cst_24 {dimension_numbers = #tpu.dot_dimension_numbers<[1], [0], [0], [1], [0, 0, 1, 1], [], []>} : vector<64x32xbf16>, vector<32x32xbf16>, vector<64x32xf32> -> vector<64x32xf32>
    %29 = arith.addf %21, %28 : vector<64x32xf32>
    %c0_25 = arith.constant 0 : index
    %c6_26 = arith.constant 6 : index
    %c0_27 = arith.constant 0 : index
    %c0_28 = arith.constant 0 : index
    %30 = vector.load %arg1[%c0_25, %c6_26, %c0_27, %c0_28] : memref<1x20x20x32xf32, #tpu.memory_space<vmem>>, vector<1x8x8x32xf32>
    %31 = vector.shape_cast %30 : vector<1x8x8x32xf32> to vector<8x8x32xf32>
    %32 = vector.shape_cast %31 : vector<8x8x32xf32> to vector<64x32xf32>
    %33 = arith.truncf %32 : vector<64x32xf32> to vector<64x32xbf16>
    %c3 = arith.constant 3 : index
    %c0_29 = arith.constant 0 : index
    %c0_30 = arith.constant 0 : index
    %34 = vector.load %arg3[%c3, %c0_29, %c0_30] : memref<8x32x32xbf16, #tpu.memory_space<vmem>>, vector<1x32x32xbf16>
    %35 = vector.shape_cast %34 : vector<1x32x32xbf16> to vector<32x32xbf16>
    %cst_31 = arith.constant dense<0.000000e+00> : vector<64x32xf32>
    %36 = tpu.matmul %33, %35, %cst_31 {dimension_numbers = #tpu.dot_dimension_numbers<[1], [0], [0], [1], [0, 0, 1, 1], [], []>} : vector<64x32xbf16>, vector<32x32xbf16>, vector<64x32xf32> -> vector<64x32xf32>
    %37 = arith.addf %29, %36 : vector<64x32xf32>
    %c0_32 = arith.constant 0 : index
    %c6_33 = arith.constant 6 : index
    %c12_34 = arith.constant 12 : index
    %c0_35 = arith.constant 0 : index
    %38 = vector.load %arg1[%c0_32, %c6_33, %c12_34, %c0_35] : memref<1x20x20x32xf32, #tpu.memory_space<vmem>>, vector<1x8x8x32xf32>
    %39 = vector.shape_cast %38 : vector<1x8x8x32xf32> to vector<8x8x32xf32>
    %40 = vector.shape_cast %39 : vector<8x8x32xf32> to vector<64x32xf32>
    %41 = arith.truncf %40 : vector<64x32xf32> to vector<64x32xbf16>
    %c4 = arith.constant 4 : index
    %c0_36 = arith.constant 0 : index
    %c0_37 = arith.constant 0 : index
    %42 = vector.load %arg3[%c4, %c0_36, %c0_37] : memref<8x32x32xbf16, #tpu.memory_space<vmem>>, vector<1x32x32xbf16>
    %43 = vector.shape_cast %42 : vector<1x32x32xbf16> to vector<32x32xbf16>
    %cst_38 = arith.constant dense<0.000000e+00> : vector<64x32xf32>
    %44 = tpu.matmul %41, %43, %cst_38 {dimension_numbers = #tpu.dot_dimension_numbers<[1], [0], [0], [1], [0, 0, 1, 1], [], []>} : vector<64x32xbf16>, vector<32x32xbf16>, vector<64x32xf32> -> vector<64x32xf32>
    %45 = arith.addf %37, %44 : vector<64x32xf32>
    %c0_39 = arith.constant 0 : index
    %c12_40 = arith.constant 12 : index
    %c0_41 = arith.constant 0 : index
    %c0_42 = arith.constant 0 : index
    %46 = vector.load %arg1[%c0_39, %c12_40, %c0_41, %c0_42] : memref<1x20x20x32xf32, #tpu.memory_space<vmem>>, vector<1x8x8x32xf32>
    %47 = vector.shape_cast %46 : vector<1x8x8x32xf32> to vector<8x8x32xf32>
    %48 = vector.shape_cast %47 : vector<8x8x32xf32> to vector<64x32xf32>
    %49 = arith.truncf %48 : vector<64x32xf32> to vector<64x32xbf16>
    %c5 = arith.constant 5 : index
    %c0_43 = arith.constant 0 : index
    %c0_44 = arith.constant 0 : index
    %50 = vector.load %arg3[%c5, %c0_43, %c0_44] : memref<8x32x32xbf16, #tpu.memory_space<vmem>>, vector<1x32x32xbf16>
    %51 = vector.shape_cast %50 : vector<1x32x32xbf16> to vector<32x32xbf16>
    %cst_45 = arith.constant dense<0.000000e+00> : vector<64x32xf32>
    %52 = tpu.matmul %49, %51, %cst_45 {dimension_numbers = #tpu.dot_dimension_numbers<[1], [0], [0], [1], [0, 0, 1, 1], [], []>} : vector<64x32xbf16>, vector<32x32xbf16>, vector<64x32xf32> -> vector<64x32xf32>
    %53 = arith.addf %45, %52 : vector<64x32xf32>
    %c0_46 = arith.constant 0 : index
    %c12_47 = arith.constant 12 : index
    %c6_48 = arith.constant 6 : index
    %c0_49 = arith.constant 0 : index
    %54 = vector.load %arg1[%c0_46, %c12_47, %c6_48, %c0_49] : memref<1x20x20x32xf32, #tpu.memory_space<vmem>>, vector<1x8x8x32xf32>
    %55 = vector.shape_cast %54 : vector<1x8x8x32xf32> to vector<8x8x32xf32>
    %56 = vector.shape_cast %55 : vector<8x8x32xf32> to vector<64x32xf32>
    %57 = arith.truncf %56 : vector<64x32xf32> to vector<64x32xbf16>
    %c6_50 = arith.constant 6 : index
    %c0_51 = arith.constant 0 : index
    %c0_52 = arith.constant 0 : index
    %58 = vector.load %arg3[%c6_50, %c0_51, %c0_52] : memref<8x32x32xbf16, #tpu.memory_space<vmem>>, vector<1x32x32xbf16>
    %59 = vector.shape_cast %58 : vector<1x32x32xbf16> to vector<32x32xbf16>
    %cst_53 = arith.constant dense<0.000000e+00> : vector<64x32xf32>
    %60 = tpu.matmul %57, %59, %cst_53 {dimension_numbers = #tpu.dot_dimension_numbers<[1], [0], [0], [1], [0, 0, 1, 1], [], []>} : vector<64x32xbf16>, vector<32x32xbf16>, vector<64x32xf32> -> vector<64x32xf32>
    %61 = arith.addf %53, %60 : vector<64x32xf32>
    %c0_54 = arith.constant 0 : index
    %c12_55 = arith.constant 12 : index
    %c12_56 = arith.constant 12 : index
    %c0_57 = arith.constant 0 : index
    %62 = vector.load %arg1[%c0_54, %c12_55, %c12_56, %c0_57] : memref<1x20x20x32xf32, #tpu.memory_space<vmem>>, vector<1x8x8x32xf32>
    %63 = vector.shape_cast %62 : vector<1x8x8x32xf32> to vector<8x8x32xf32>
    %64 = vector.shape_cast %63 : vector<8x8x32xf32> to vector<64x32xf32>
    %65 = arith.truncf %64 : vector<64x32xf32> to vector<64x32xbf16>
    %c7 = arith.constant 7 : index
    %c0_58 = arith.constant 0 : index
    %c0_59 = arith.constant 0 : index
    %66 = vector.load %arg3[%c7, %c0_58, %c0_59] : memref<8x32x32xbf16, #tpu.memory_space<vmem>>, vector<1x32x32xbf16>
    %67 = vector.shape_cast %66 : vector<1x32x32xbf16> to vector<32x32xbf16>
    %cst_60 = arith.constant dense<0.000000e+00> : vector<64x32xf32>
    %68 = tpu.matmul %65, %67, %cst_60 {dimension_numbers = #tpu.dot_dimension_numbers<[1], [0], [0], [1], [0, 0, 1, 1], [], []>} : vector<64x32xbf16>, vector<32x32xbf16>, vector<64x32xf32> -> vector<64x32xf32>
    %69 = arith.addf %61, %68 : vector<64x32xf32>
    %cst_61 = arith.constant dense<0.000000e+00> : vector<32xf32>
    %70 = vector.multi_reduction <add>, %2, %cst_61 [0] : vector<64x32xf32> to vector<32xf32>
    %71 = vector.shape_cast %70 : vector<32xf32> to vector<1x32xf32>
    %cst_62 = arith.constant 6.400000e+01 : f32
    %72 = vector.broadcast %cst_62 : f32 to vector<1x32xf32>
    %73 = arith.divf %71, %72 : vector<1x32xf32>
    %c0_63 = arith.constant 0 : index
    %c0_64 = arith.constant 0 : index
    %74 = vector.load %arg4[%c0_63, %c0_64] : memref<32x32xf32, #tpu.memory_space<vmem>>, vector<32x32xf32>
    %cst_65 = arith.constant dense<0.000000e+00> : vector<1x32xf32>
    %75 = tpu.matmul %73, %74, %cst_65 {dimension_numbers = #tpu.dot_dimension_numbers<[1], [0], [0], [1], [0, 0, 1, 1], [], []>} : vector<1x32xf32>, vector<32x32xf32>, vector<1x32xf32> -> vector<1x32xf32>
    %c0_66 = arith.constant 0 : index
    %c0_67 = arith.constant 0 : index
    %76 = vector.load %arg5[%c0_66, %c0_67] : memref<1x32xf32, #tpu.memory_space<vmem>>, vector<1x32xf32>
    %77 = arith.addf %75, %76 : vector<1x32xf32>
    %78 = vector.broadcast %77 : vector<1x32xf32> to vector<64x32xf32>
    %79 = arith.addf %69, %78 : vector<64x32xf32>
    %cst_68 = arith.constant 0.000000e+00 : f32
    %80 = vector.broadcast %cst_68 : f32 to vector<64x32xf32>
    %81 = arith.maximumf %79, %80 : vector<64x32xf32>
    %c0_69 = arith.constant 0 : index
    %c0_70 = arith.constant 0 : index
    %82 = vector.load %arg6[%c0_69, %c0_70] : memref<32x128xf32, #tpu.memory_space<vmem>>, vector<32x128xf32>
    %cst_71 = arith.constant dense<0.000000e+00> : vector<64x128xf32>
    %83 = tpu.matmul %81, %82, %cst_71 {dimension_numbers = #tpu.dot_dimension_numbers<[1], [0], [0], [1], [0, 0, 1, 1], [], []>} : vector<64x32xf32>, vector<32x128xf32>, vector<64x128xf32> -> vector<64x128xf32>
    %c0_72 = arith.constant 0 : index
    %c0_73 = arith.constant 0 : index
    %84 = vector.load %arg7[%c0_72, %c0_73] : memref<1x128xf32, #tpu.memory_space<vmem>>, vector<1x128xf32>
    %85 = vector.broadcast %84 : vector<1x128xf32> to vector<64x128xf32>
    %86 = arith.addf %83, %85 : vector<64x128xf32>
    %c0_74 = arith.constant 0 : index
    %c0_75 = arith.constant 0 : index
    %87 = vector.load %arg8[%c0_74, %c0_75] : memref<256x64xf32, #tpu.memory_space<vmem>>, vector<256x64xf32>
    %cst_76 = arith.constant dense<0.000000e+00> : vector<256x128xf32>
    %88 = tpu.matmul %87, %86, %cst_76 {dimension_numbers = #tpu.dot_dimension_numbers<[1], [0], [0], [1], [0, 0, 1, 1], [], []>} : vector<256x64xf32>, vector<64x128xf32>, vector<256x128xf32> -> vector<256x128xf32>
    %c0_77 = arith.constant 0 : index
    %c0_78 = arith.constant 0 : index
    %c0_79 = arith.constant 0 : index
    %89 = vector.load %arg9[%c0_77, %c0_78, %c0_79] : memref<1x256x128xf32, #tpu.memory_space<vmem>>, vector<1x256x128xf32>
    %90 = vector.shape_cast %89 : vector<1x256x128xf32> to vector<256x128xf32>
    %91 = vector.shape_cast %88 : vector<256x128xf32> to vector<1x256x128xf32>
    tpu.vector_store %arg9[%c0_77, %c0_78, %c0_79], %91 {strides = array<i32>} : memref<1x256x128xf32, #tpu.memory_space<vmem>>, vector<1x256x128xf32>,
    return
  }
  func.func @transform_0(%arg0: i32) -> (i32, i32, i32, i32) {
    %c0_i32 = arith.constant 0 : i32
    %c0_i32_0 = arith.constant 0 : i32
    %c0_i32_1 = arith.constant 0 : i32
    %c0_i32_2 = arith.constant 0 : i32
    return %arg0, %c0_i32, %c0_i32_0, %c0_i32_1 : i32, i32, i32, i32
  }
  func.func @transform_1(%arg0: i32) -> (i32, i32) {
    %c0_i32 = arith.constant 0 : i32
    %c0_i32_0 = arith.constant 0 : i32
    %c0_i32_1 = arith.constant 0 : i32
    return %c0_i32, %c0_i32_0 : i32, i32
  }
  func.func @transform_2(%arg0: i32) -> (i32, i32, i32) {
    %c0_i32 = arith.constant 0 : i32
    %c0_i32_0 = arith.constant 0 : i32
    %c0_i32_1 = arith.constant 0 : i32
    %c0_i32_2 = arith.constant 0 : i32
    return %c0_i32, %c0_i32_0, %c0_i32_1 : i32, i32, i32
  }
  func.func @transform_3(%arg0: i32) -> (i32, i32) {
    %c0_i32 = arith.constant 0 : i32
    %c0_i32_0 = arith.constant 0 : i32
    %c0_i32_1 = arith.constant 0 : i32
    return %c0_i32, %c0_i32_0 : i32, i32
  }
  func.func @transform_4(%arg0: i32) -> (i32, i32) {
    %c0_i32 = arith.constant 0 : i32
    %c0_i32_0 = arith.constant 0 : i32
    %c0_i32_1 = arith.constant 0 : i32
    return %c0_i32, %c0_i32_0 : i32, i32
  }
  func.func @transform_5(%arg0: i32) -> (i32, i32) {
    %c0_i32 = arith.constant 0 : i32
    %c0_i32_0 = arith.constant 0 : i32
    %c0_i32_1 = arith.constant 0 : i32
    return %c0_i32, %c0_i32_0 : i32, i32
  }
  func.func @transform_6(%arg0: i32) -> (i32, i32) {
    %c0_i32 = arith.constant 0 : i32
    %c0_i32_0 = arith.constant 0 : i32
    %c0_i32_1 = arith.constant 0 : i32
    return %c0_i32, %c0_i32_0 : i32, i32
  }
  func.func @transform_7(%arg0: i32) -> (i32, i32) {
    %c0_i32 = arith.constant 0 : i32
    %c0_i32_0 = arith.constant 0 : i32
    %c0_i32_1 = arith.constant 0 : i32
    return %c0_i32, %c0_i32_0 : i32, i32
  }
  func.func @transform_8(%arg0: i32) -> (i32, i32, i32) {
    %c0_i32 = arith.constant 0 : i32
    %c0_i32_0 = arith.constant 0 : i32
    %c0_i32_1 = arith.constant 0 : i32
    return %arg0, %c0_i32, %c0_i32_0 : i32, i32, i32
  }
}

</mosaic_0001>

<bundles_post_ra>
// kernel: model_forward.1
= control target key start
LH: loop header
LB: loop body
LE: loop exit
PB: predicated region body
PF: predicated region fallthrough
CT: control target
= control target key end

     0   :  { %s2617_s27 = smov 0   ;;  %s3059_s0 = inlined_call_operand.vmem [shape: f32[2,20,20,32], index: 0, kind: input, shape index: {}]   ;;  %s3060_s1 = inlined_call_operand.vmem [shape: bf16[32,32], index: 1, kind: input, shape index: {}]   ;;  %s3061_s2 = inlined_call_operand.vmem [shape: bf16[8,32,32], index: 2, kind: input, shape index: {}]   ;;  %s3062_s3 = inlined_call_operand.vmem [shape: f32[32,32], index: 3, kind: input, shape index: {}]   ;;  %s3063_s4 = inlined_call_operand.vmem [shape: f32[1,32], index: 4, kind: input, shape index: {}]   ;;  %s3064_s5 = inlined_call_operand.vmem [shape: f32[32,128], index: 5, kind: input, shape index: {}]   ;;  %s3065_s6 = inlined_call_operand.vmem [shape: f32[1,128], index: 6, kind: input, shape index: {}]   ;;  %s3066_s7 = inlined_call_operand.vmem [shape: f32[256,64], index: 7, kind: input, shape index: {}]   ;;  %s3067_s8 = inlined_call_operand.vmem [shape: f32[2,256,128], index: 8, kind: output, shape index: {}]  }
   0x1 LB: > { %s2020_s28 = sadd.s32 4294967295, %s2568_s27   ;;  %p2024_p0 = scmp.ge.s32.totalorder %s2568_s27, 1  ;;  %s2568_s27 = sphi %s2617_s27, %s18_s27  }
   0x2   : > { %p262_p1 = scmp.lt.s32.totalorder %s2568_s27, 3 }
   0x4   : > { %p263_p2 = pnand %p2024_p0, %p262_p1 }
   0x6   : > { %266 = sbr.rel (%p263_p2) target bundleno = 742 (0x2e6), region = 52 }
   0xb   : > { %v2544_v0 = vld [vmem:[%s3061_s2 + $0x8] sm:$0xff]   ;;  %p296_p3 = scmp.lt.s32.totalorder %s2020_s28, 1  ;;  %v2546_v2 = vld [vmem:[%s3061_s2] sm:$0xff]   ;;  %v2548_v4 = vld [vmem:[%s3061_s2 + $0x18] sm:$0xff]   ;;  %vm352_vm0 = vcmask 261120   ;;  %vm2571_vm1 = vmmov 0  }
   0xc   : > { %v2545_v1 = vld [vmem:[%s3060_s1 + $0x8] sm:$0xff]   ;;  %2314 = vmatprep.subr.bf16.mxu0 %v2544_v0  ;;  %v2547_v3 = vld [vmem:[%s3060_s1] sm:$0xff]   ;;  %v2550_v26 = vld [vmem:[%s3061_s2 + $0x10] sm:$0xff]   ;;  %vm1611_vm2 = vcmask 523264  }
   0xd   : > { %s3079_s28 = smov (!%p296_p3, %s2020_s28), 1  ;;  %2326 = vmatprep.subr.bf16.mxu1 %v2545_v1  ;;  %2315 = vmatpush3.bf16.msra.mxu0 %v2544_v0  ;;  %v2549_v5 = vld [vmem:[%s3061_s2 + $0x28] sm:$0xff]   ;;  %v2551_v29 = vld [vmem:[%s3061_s2 + $0x20] sm:$0xff]   ;;  %v2552_v37 = vld [vmem:[%s3061_s2 + $0x38] sm:$0xff]  }
   0xe   : > { %2327 = vmatpush3.bf16.msra.mxu1 %v2545_v1  ;;  %2316 = vmatprep.subr.bf16.mxu0 %v2546_v2  ;;  %s2533_s15 = smul.u32 480, %s3079_s28  ;;  %v2553_v41 = vld [vmem:[%s3061_s2 + $0x48] sm:$0xff]   ;;  %v2554_v58 = vld [vmem:[%s3061_s2 + $0x30] sm:$0xff]   ;;  %v2555_v59 = vld [vmem:[%s3061_s2 + $0x40] sm:$0xff]   ;;  %s2202_s12 = sshll.u32 %s3079_s28, 8 }
   0xf   : > { %2328 = vmatprep.subr.bf16.mxu1 %v2547_v3  ;;  %v2556_v0 = vld [vmem:[%s3061_s2 + $0x58] sm:$0xff]   ;;  %v2557_v1 = vld [vmem:[%s3061_s2 + $0x68] sm:$0xff]  }
  0x10   : > { %s2649_s22 = scalar_lea.vmem %s3059_s0, %s2533_s15  ;;  %s3022_s15 = scalar_lea.vmem %s3067_s8, %s2202_s12 }
  0x11   : > { %2317 = vmatpush3.bf16.msra.mxu0 %v2546_v2  ;;  %v324_v6 = vld [vmem:[%s2649_s22] sm:$0xff]  ;;  %v325_v7 = vld [vmem:[%s2649_s22 + $0x18] sm:$0xff]  ;;  %v2029_v10 = vld [vmem:[%s2649_s22 + $0xae] sm:$0xff] }
  0x12   : > { %v2028_v8 = vld [vmem:[%s2649_s22 + $0x96] sm:$0xff]  ;;  %2329 = vmatpush3.bf16.msra.mxu1 %v2547_v3  ;;  %v332_v9 = vpack.c.bf16 %v325_v7, %v324_v6  ;;  %v2030_v11 = vld [vmem:[%s2649_s22 + $0xc6] sm:$0xff]  ;;  %v2657_v12 = vld [vmem:[%s2649_s22 + $0xde] sm:$0xff]  ;;  %2338 = vmatprep.subr.bf16.mxu0 %v2548_v4  ;;  %v1319_v38 = vsel %vm352_vm0, %v2029_v10, 0.0 }
  0x13   : > { %v2659_v13 = vpack.c.bf16 %v2029_v10, %v2028_v8  ;;  %v326_v14 = vld [vmem:[%s2649_s22 + $0x30] sm:$0xff]  ;;  %v327_v15 = vld [vmem:[%s2649_s22 + $0x48] sm:$0xff]  ;;  %2350 = vmatprep.subr.bf16.mxu1 %v2549_v5  ;;  %v328_v16 = vld [vmem:[%s2649_s22 + $0x60] sm:$0xff]  ;;  %v317_v18 = vpack.c.bf16 %v2657_v12, %v2030_v11  ;;  %v1318_v34 = vsel %vm352_vm0, %v2028_v8, 0.0  ;;  %v1321_v46 = vsel %vm352_vm0, %v2030_v11, 0.0 }
  0x14   : > { %2318 = vmatprep.mubr.msk.bf16.mxu0 %vm352_vm0, %v332_v9  ;;  %v333_v17 = vpack.c.bf16 %v327_v15, %v326_v14  ;;  %v329_v19 = vld [vmem:[%s2649_s22 + $0x78] sm:$0xff]  ;;  %v2669_v21 = vld [vmem:[%s2649_s22 + $0x10e] sm:$0xff]  ;;  %v2682_v27 = vld [vmem:[%s2649_s22 + $0x126] sm:$0xff]  ;;  %v1320_v44 = vadd.f32 %v1319_v38, %v1318_v34  ;;  %v1323_v55 = vsel %vm352_vm0, %v2657_v12, 0.0 }
  0x15   : > { %v2032_v20 = vld [vmem:[%s2649_s22 + $0xf6] sm:$0xff]  ;;  %2330 = vmatprep.mubr.msk.bf16.mxu1 %vm352_vm0, %v2659_v13  ;;  %v334_v22 = vpack.c.bf16 %v329_v19, %v328_v16  ;;  %v331_v25 = vld [vmem:[%s2649_s22 + $0xa8] sm:$0xff]  ;;  %v2685_v28 = vld [vmem:[%s2649_s22 + $0x13e] sm:$0xff]  ;;  %v1329_v7 = vsel %vm352_vm0, %v2682_v27, 0.0 }
  0x16   : > { %v318_v23 = vpack.c.bf16 %v2669_v21, %v2032_v20  ;;  %v330_v24 = vld [vmem:[%s2649_s22 + $0x90] sm:$0xff]  ;;  %2319 = vmatmul.mubr.msk.bf16.vlgmr.msra.gmra.mxu0 %vm352_vm0, %v333_v17  ;;  %2331 = vmatmul.mubr.msk.bf16.vlgmr.msra.gmra.mxu1 %vm352_vm0, %v317_v18  ;;  %v519_v30 = vld [vmem:[%s2649_s22 + $0x6] sm:$0xff]  ;;  %v520_v31 = vld [vmem:[%s2649_s22 + $0x1e] sm:$0xff]  ;;  %v2699_v36 = vpack.c.bf16 %v2685_v28, %v2682_v27  ;;  %v1322_v52 = vadd.f32 %v1321_v46, %v1320_v44  ;;  %v1325_v62 = vsel %vm352_vm0, %v2032_v20, 0.0 }
  0x17   : > { %2339 = vmatpush3.bf16.msra.mxu0 %v2548_v4  ;;  %2351 = vmatpush3.bf16.msra.mxu1 %v2549_v5  ;;  %v633_v32 = vld [vmem:[%s2649_s22 + $0xc] sm:$0xff]  ;;  %v634_v33 = vld [vmem:[%s2649_s22 + $0x24] sm:$0xff]  ;;  %v335_v35 = vpack.c.bf16 %v331_v25, %v330_v24  ;;  %v527_v39 = vpack.c.bf16 %v520_v31, %v519_v30  ;;  %v521_v42 = vld [vmem:[%s2649_s22 + $0x36] sm:$0xff]  ;;  %v1327_v4 = vsel %vm352_vm0, %v2669_v21, 0.0  ;;  %v1331_v18 = vsel %vm352_vm0, %v2685_v28, 0.0 }
  0x18   : > { %2322 = vmatprep.mubr.msk.bf16.mxu0 %vm352_vm0, %v334_v22  ;;  %2334 = vmatprep.mubr.msk.bf16.mxu1 %vm352_vm0, %v318_v23  ;;  %v641_v40 = vpack.c.bf16 %v634_v33, %v633_v32  ;;  %v522_v43 = vld [vmem:[%s2649_s22 + $0x4e] sm:$0xff]  ;;  %v635_v45 = vld [vmem:[%s2649_s22 + $0x3c] sm:$0xff]  ;;  %v523_v48 = vld [vmem:[%s2649_s22 + $0x66] sm:$0xff]  ;;  %v1324_v60 = vadd.f32 %v1323_v55, %v1322_v52  ;;  %v2570_v32 = vmov 0.0  }
  0x19   : > { %2340 = vmatprep.subr.bf16.mxu0 %v2550_v26  ;;  %2352 = vmatprep.subr.bf16.mxu1 %v2551_v29  ;;  %v636_v47 = vld [vmem:[%s2649_s22 + $0x54] sm:$0xff]  ;;  %v524_v49 = vld [vmem:[%s2649_s22 + $0x7e] sm:$0xff]  ;;  %v637_v50 = vld [vmem:[%s2649_s22 + $0x6c] sm:$0xff]  ;;  %v528_v53 = vpack.c.bf16 %v522_v43, %v521_v42 }
  0x1a   : > { %v638_v51 = vld [vmem:[%s2649_s22 + $0x84] sm:$0xff]  ;;  %v642_v54 = vpack.c.bf16 %v636_v47, %v635_v45  ;;  %v529_v56 = vpack.c.bf16 %v524_v49, %v523_v48  ;;  %v639_v61 = vld [vmem:[%s2649_s22 + $0x9c] sm:$0xff]  ;;  %v640_v63 = vld [vmem:[%s2649_s22 + $0xb4] sm:$0xff]  ;;  %v1326_v2 = vadd.f32 %v1325_v62, %v1324_v60 }
  0x1b   : > { %2341 = vmatpush3.bf16.msra.mxu0 %v2550_v26  ;;  %2353 = vmatpush3.bf16.msra.mxu1 %v2551_v29  ;;  %v643_v57 = vpack.c.bf16 %v638_v51, %v637_v50  ;;  %v644_v3 = vpack.c.bf16 %v640_v63, %v639_v61  ;;  %v2070_v6 = vld [vmem:[%s2649_s22 + $0xc0] sm:$0xff]  ;;  %v2071_v8 = vld [vmem:[%s2649_s22 + $0xd8] sm:$0xff]  ;;  %v2088_v9 = vld [vmem:[%s2649_s22 + $0xcc] sm:$0xff] }
  0x1c   : > { %2362 = vmatprep.subr.bf16.mxu0 %v2552_v37  ;;  %2374 = vmatprep.subr.bf16.mxu1 %v2553_v41  ;;  %v1328_v5 = vadd.f32 %v1327_v4, %v1326_v2  ;;  %v2089_v10 = vld [vmem:[%s2649_s22 + $0xe4] sm:$0xff]  ;;  %v2072_v11 = vld [vmem:[%s2649_s22 + $0xf0] sm:$0xff]  ;;  %v2090_v14 = vld [vmem:[%s2649_s22 + $0xfc] sm:$0xff]  ;;  %v756_v16 = vpack.c.bf16 %v2071_v8, %v2070_v6 }
  0x1d   : > { %v2073_v12 = vld [vmem:[%s2649_s22 + $0x108] sm:$0xff]  ;;  %v2091_v15 = vld [vmem:[%s2649_s22 + $0x114] sm:$0xff]  ;;  %v870_v17 = vpack.c.bf16 %v2089_v10, %v2088_v9  ;;  %v2559_v22 = vld [vmem:[%s3061_s2 + $0x60] sm:$0xff]  }
  0x1e   : > { %2323 = vmatmul.mubr.msk.bf16.gmra.mxu0 %vm352_vm0, %v335_v35  ;;  %2335 = vmatmul.mubr.msk.bf16.gmra.mxu1 %vm352_vm0, %v2699_v36  ;;  %v757_v19 = vpack.c.bf16 %v2073_v12, %v2072_v11  ;;  %v871_v20 = vpack.c.bf16 %v2091_v15, %v2090_v14  ;;  %v2558_v21 = vld [vmem:[%s3061_s2 + $0x50] sm:$0xff]   ;;  %v2074_v24 = vld [vmem:[%s2649_s22 + $0x120] sm:$0xff]  ;;  %v2075_v25 = vld [vmem:[%s2649_s22 + $0x138] sm:$0xff] }
  0x1f   : > { %2342 = vmatprep.mubr.msk.bf16.mxu0 %vm352_vm0, %v527_v39  ;;  %2354 = vmatprep.mubr.msk.bf16.mxu1 %vm352_vm0, %v641_v40  ;;  %v2092_v26 = vld [vmem:[%s2649_s22 + $0x12c] sm:$0xff]  ;;  %v2093_v27 = vld [vmem:[%s2649_s22 + $0x144] sm:$0xff]  ;;  %v2560_v28 = vld [vmem:[%s3061_s2 + $0x78] sm:$0xff]   ;;  %v758_v30 = vpack.c.bf16 %v2075_v25, %v2074_v24 }
  0x20   : > { %v872_v31 = vpack.c.bf16 %v2093_v27, %v2092_v26  ;;  %v2106_v34 = vld [vmem:[%s2649_s22 + $0x150] sm:$0xff]  ;;  %v2108_v39 = vld [vmem:[%s2649_s22 + $0x180] sm:$0xff]  ;;  %v2109_v40 = vld [vmem:[%s2649_s22 + $0x198] sm:$0xff] }
  0x21   : > { %v2125_v38 = vld [vmem:[%s2649_s22 + $0x16e] sm:$0xff]  ;;  %v2127_v42 = vld [vmem:[%s2649_s22 + $0x19e] sm:$0xff]  ;;  %v986_v47 = vpack.c.bf16 %v2109_v40, %v2108_v39  ;;  %v2128_v52 = vld [vmem:[%s2649_s22 + $0x1b6] sm:$0xff] }
  0x22   : > { %v1344_v46 = vld [vmem:[%s3062_s3 + $0x18] sm:$0xff]  ;;  %v2561_v48 = vld [vmem:[%s3061_s2 + $0x70] sm:$0xff]   ;;  %v2111_v51 = vld [vmem:[%s2649_s22 + $0x1c8] sm:$0xff] }
  0x23   : > { %v2110_v50 = vld [vmem:[%s2649_s22 + $0x1b0] sm:$0xff]  ;;  %v1342_v55 = vld [vmem:[%s3062_s3 + $0x8] sm:$0xff]  ;;  %v2142_v61 = vld [vmem:[%s2649_s22 + $0x15c] sm:$0xff] }
  0x24   : > { %v2143_v62 = vld [vmem:[%s2649_s22 + $0x174] sm:$0xff]  ;;  %v2144_v63 = vld [vmem:[%s2649_s22 + $0x18c] sm:$0xff]  ;;  %v2146_v4 = vld [vmem:[%s2649_s22 + $0x1bc] sm:$0xff] }
  0x25   : > { %v1213_v2 = vpack.c.bf16 %v2143_v62, %v2142_v61  ;;  %v1441_v8 = vld [vmem:[%s3064_s5 + $0x10] sm:$0xff]  ;;  %v1440_v9 = vld [vmem:[%s3064_s5 + $0x8] sm:$0xff]  ;;  %v1439_v10 = vld [vmem:[%s3064_s5] sm:$0xff] }
  0x26   : > { %2343 = vmatmul.mubr.msk.bf16.vlgmr.msra.gmra.mxu0 %vm352_vm0, %v528_v53  ;;  %2355 = vmatmul.mubr.msk.bf16.vlgmr.msra.gmra.mxu1 %vm352_vm0, %v642_v54  ;;  %v2129_v53 = vld [vmem:[%s2649_s22 + $0x1ce] sm:$0xff] }
  0x27   : > { %2363 = vmatpush3.bf16.msra.mxu0 %v2552_v37  ;;  %2375 = vmatpush3.bf16.msra.mxu1 %v2553_v41  ;;  %v2124_v37 = vld [vmem:[%s2649_s22 + $0x156] sm:$0xff]  ;;  %v2126_v41 = vld [vmem:[%s2649_s22 + $0x186] sm:$0xff] }
  0x28   : > { %2346 = vmatprep.mubr.msk.bf16.mxu0 %vm352_vm0, %v529_v56  ;;  %2358 = vmatprep.mubr.msk.bf16.mxu1 %vm352_vm0, %v643_v57  ;;  %v1099_v45 = vpack.c.bf16 %v2125_v38, %v2124_v37  ;;  %v1343_v54 = vld [vmem:[%s3062_s3 + $0x10] sm:$0xff]  ;;  %v987_v57 = vpack.c.bf16 %v2111_v51, %v2110_v50 }
  0x29   : > { %2364 = vmatprep.subr.bf16.mxu0 %v2554_v58  ;;  %2376 = vmatprep.subr.bf16.mxu1 %v2555_v59 }
  0x2b   : > { %2365 = vmatpush3.bf16.msra.mxu0 %v2554_v58  ;;  %2377 = vmatpush3.bf16.msra.mxu1 %v2555_v59  ;;  %v1101_v58 = vpack.c.bf16 %v2129_v53, %v2128_v52  ;;  %v1341_v59 = vld [vmem:[%s3062_s3] sm:$0xff] }
  0x2c   : > { %2386 = vmatprep.subr.bf16.mxu0 %v2556_v0  ;;  %2398 = vmatprep.subr.bf16.mxu1 %v2557_v1 }
  0x2e   : > { %2347 = vmatmul.mubr.msk.bf16.gmra.mxu0 %vm352_vm0, %v2659_v13  ;;  %2359 = vmatmul.mubr.msk.bf16.gmra.mxu1 %vm352_vm0, %v644_v3  ;;  %v1330_v13 = vadd.f32 %v1329_v7, %v1328_v5  ;;  %v2147_v5 = vld [vmem:[%s2649_s22 + $0x1d4] sm:$0xff] }
  0x2f   : > { %2366 = vmatprep.mubr.msk.bf16.mxu0 %vm352_vm0, %v335_v35  ;;  %2378 = vmatprep.mubr.msk.bf16.mxu1 %vm352_vm0, %v644_v3  ;;  %v2107_v35 = vld [vmem:[%s2649_s22 + $0x168] sm:$0xff]  ;;  %v1215_v6 = vpack.c.bf16 %v2147_v5, %v2146_v4  ;;  %v1442_v7 = vld [vmem:[%s3064_s5 + $0x18] sm:$0xff] }
  0x30   : > { %v1332_v23 = vadd.f32 %v1331_v18, %v1330_v13  ;;  %v985_v44 = vpack.c.bf16 %v2107_v35, %v2106_v34 }
  0x32   : > { %v1333_v29 = vrot.slane %v1332_v23, 4 }
  0x34   : > { %v1334_v33 = vadd.f32 %v1333_v29, %v1332_v23 }
  0x36   : > { %2367 = vmatmul.mubr.msk.bf16.vlgmr.msra.gmra.mxu0 %vm352_vm0, %v756_v16  ;;  %2379 = vmatmul.mubr.msk.bf16.vlgmr.msra.gmra.mxu1 %vm352_vm0, %v870_v17  ;;  %v1335_v43 = vrot.slane %v1334_v33, 2 }
  0x37   : > { %2387 = vmatpush3.bf16.msra.mxu0 %v2556_v0  ;;  %2399 = vmatpush3.bf16.msra.mxu1 %v2557_v1  ;;  %v2145_v0 = vld [vmem:[%s2649_s22 + $0x1a4] sm:$0xff] }
  0x38   : > { %2370 = vmatprep.mubr.msk.bf16.mxu0 %vm352_vm0, %v757_v19  ;;  %2382 = vmatprep.mubr.msk.bf16.mxu1 %vm352_vm0, %v871_v20  ;;  %v1336_v49 = vadd.f32 %v1335_v43, %v1334_v33  ;;  %v1214_v3 = vpack.c.bf16 %v2145_v0, %v2144_v63 }
  0x39   : > { %2388 = vmatprep.subr.bf16.mxu0 %v2558_v21  ;;  %2400 = vmatprep.subr.bf16.mxu1 %v2559_v22 }
  0x3a   : > { %v1337_v56 = vrot.slane %v1336_v49, 1 }
  0x3b   : > { %2389 = vmatpush3.bf16.msra.mxu0 %v2558_v21  ;;  %2401 = vmatpush3.bf16.msra.mxu1 %v2559_v22 }
  0x3c   : > { %2410 = vmatprep.subr.bf16.mxu0 %v2560_v28  ;;  %2422 = vmatprep.subr.mxu1 %v2570_v32  ;;  %v1338_v60 = vadd.f32 %v1337_v56, %v1336_v49 }
  0x3e   : > { %2371 = vmatmul.mubr.msk.bf16.gmra.mxu0 %vm352_vm0, %v758_v30  ;;  %2383 = vmatmul.mubr.msk.bf16.gmra.mxu1 %vm352_vm0, %v872_v31  ;;  %v1340_v1 = vmul.f32 0.015625, %v1338_v60 }
  0x3f   : > { %2390 = vmatprep.mubr.msk.bf16.mxu0 %vm352_vm0, %v758_v30  ;;  %2402 = vmatprep.mubr.msk.bf16.mxu1 %vm352_vm0, %v2699_v36  ;;  %v1100_v36 = vpack.c.bf16 %v2127_v42, %v2126_v41 }
  0x46   : > { %2391 = vmatmul.mubr.msk.bf16.vlgmr.msra.gmra.mxu0 %vm352_vm0, %v985_v44  ;;  %2403 = vmatmul.mubr.msk.bf16.vlgmr.msra.gmra.mxu1 %vm352_vm0, %v1099_v45 }
  0x47   : > { %2411 = vmatpush3.bf16.msra.mxu0 %v2560_v28  ;;  %2423 = vmatpush3.msra.mxu1 %v1344_v46 }
  0x48   : > { %2394 = vmatprep.mubr.msk.bf16.mxu0 %vm352_vm0, %v986_v47  ;;  %2406 = vmatprep.mubr.msk.bf16.mxu1 %vm352_vm0, %v1100_v36 }
  0x49   : > { %2424 = vmatprep.subr.mxu1 %v2570_v32  ;;  %2412 = vmatprep.subr.bf16.mxu0 %v2561_v48 }
  0x4a   : > { %2425 = vmatpush3.msra.mxu1 %v1343_v54 }
  0x4b   : > { %2413 = vmatpush3.bf16.msra.mxu0 %v2561_v48  ;;  %2426 = vmatprep.subr.mxu1 %v2570_v32 }
  0x4c   : > { %2427 = vmatpush3.msra.mxu1 %v1342_v55 }
  0x4d   : > { %2428 = vmatprep.subr.mxu1 %v2570_v32 }
  0x4e   : > { %2395 = vmatmul.mubr.msk.bf16.gmra.mxu0 %vm352_vm0, %v987_v57  ;;  %2407 = vmatmul.mubr.msk.bf16.gmra.mxu1 %vm352_vm0, %v1101_v58 }
  0x4f   : > { %2414 = vmatprep.mubr.msk.bf16.mxu0 %vm352_vm0, %v872_v31  ;;  %2429 = vmatpush3.msra.mxu1 %v1341_v59 }
  0x50   : > { %2430 = vmatprep.mubr.msk.f32.mxu1 %vm2571_vm1, %v2570_v32  ;;  %2433 = vmatprep.subr.mxu1 %v1442_v7 }
  0x56   : > { %2415 = vmatmul.mubr.msk.bf16.vlgmr.msra.gmra.mxu0 %vm352_vm0, %v1213_v2  ;;  %2431 = vmatmul.mubr.msk.f32.vlgmr.msra.gmra.mxu1 %vm352_vm0, %v1340_v1 }
  0x57   : > { %2418 = vmatprep.mubr.msk.bf16.mxu0 %vm352_vm0, %v1214_v3  ;;  %2434 = vmatpush3.msra.mxu1 %v1442_v7 }
  0x58   : > { %2435 = vmatprep.subr.mxu1 %v1441_v8 }
  0x59   : > { %2436 = vmatpush3.msra.mxu1 %v1441_v8 }
  0x5a   : > { %2437 = vmatprep.subr.mxu1 %v1440_v9 }
  0x5b   : > { %2438 = vmatpush3.msra.mxu1 %v1440_v9 }
  0x5c   : > { %2439 = vmatprep.subr.mxu1 %v1439_v10 }
  0x5d   : > { %2440 = vmatpush3.msra.mxu1 %v1439_v10 }
  0x5e   : > { %2419 = vmatmul.mubr.msk.bf16.gmra.mxu0 %vm352_vm0, %v1215_v6 }
  0xd6   : > { %v2320_v11 = vpop.f32.mrf.mxu0  ;;  %v2332_v12 = vpop.f32.mrf.mxu1 }
  0xd7   : > { %v497_v63 = vadd.f32 %v2332_v12, %v2320_v11 }
  0xd8   : > { %v399_v14 = vpop.f32.mrf.mxu0  ;;  %v488_v15 = vpop.f32.mrf.mxu1 }
  0xd9   : > { %v489_v59 = vadd.f32 %v488_v15, %v399_v14  ;;  %v1419_v14 = vlaneseq }
  0xda   : > { %v2321_v13 = vpop.f32.mrf.mxu0  ;;  %v2333_v16 = vpop.f32.mrf.mxu1 }
  0xdb   : > { %v500_v2 = vadd.f32 %v2333_v16, %v2321_v13 }
  0xdc   : > { %v402_v17 = vpop.f32.mrf.mxu0  ;;  %v491_v18 = vpop.f32.mrf.mxu1 }
  0xdd   : > { %v492_v3 = vadd.f32 %v491_v18, %v402_v17 }
  0xde   : > { %v2324_v19 = vpop.f32.mrf.mxu0  ;;  %v2336_v20 = vpop.f32.mrf.mxu1 }
  0xdf   : > { %v513_v15 = vadd.f32 %v2336_v20, %v2324_v19 }
  0xe0   : > { %v415_v21 = vpop.f32.mrf.mxu0  ;;  %v504_v22 = vpop.f32.mrf.mxu1 }
  0xe2   : > { %v2840_v23 = vpop.f32.mrf.mxu0  ;;  %v2337_v24 = vpop.f32.mrf.mxu1 }
  0xe3   : > { %v516_v16 = vadd.f32 %v2337_v24, %v2840_v23  ;;  %v1345_v24 = vld [vmem:[%s3063_s4] sm:$0x1] }
  0xe4   : > { %v418_v25 = vpop.f32.mrf.mxu0  ;;  %v507_v26 = vpop.f32.mrf.mxu1 }
  0xe5   : > { %v508_v17 = vadd.f32 %v507_v26, %v418_v25 }
  0xe6   : > { %v2344_v27 = vpop.f32.mrf.mxu0  ;;  %v2356_v28 = vpop.f32.mrf.mxu1 }
  0xe7   : > { %v627_v4 = vadd.f32 %v2344_v27, %v497_v63 }
  0xe8   : > { %v594_v29 = vpop.f32.mrf.mxu0  ;;  %v708_v30 = vpop.f32.mrf.mxu1 }
  0xe9   : > { %v625_v62 = vadd.f32 %v594_v29, %v489_v59 }
  0xea   : > { %v2345_v31 = vpop.f32.mrf.mxu0  ;;  %v2357_v32 = vpop.f32.mrf.mxu1 }
  0xeb   : > { %v739_v7 = vadd.f32 %v708_v30, %v625_v62  ;;  %v628_v8 = vadd.f32 %v2345_v31, %v500_v2 }
  0xec   : > { %v597_v33 = vpop.f32.mrf.mxu0  ;;  %v711_v34 = vpop.f32.mrf.mxu1 }
  0xed   : > { %v626_v9 = vadd.f32 %v597_v33, %v492_v3  ;;  %v742_v11 = vadd.f32 %v2357_v32, %v628_v8 }
  0xee   : > { %v2348_v35 = vpop.f32.mrf.mxu0  ;;  %v2842_v37 = vpop.f32.mrf.mxu1 }
  0xef   : > { %v740_v12 = vadd.f32 %v711_v34, %v626_v9  ;;  %v631_v18 = vadd.f32 %v2348_v35, %v513_v15 }
  0xf0   : > { %v610_v38 = vpop.f32.mrf.mxu0  ;;  %v724_v39 = vpop.f32.mrf.mxu1 }
  0xf1   : > { %v745_v32 = vadd.f32 %v2842_v37, %v631_v18 }
  0xf2   : > { %v2349_v40 = vpop.f32.mrf.mxu0  ;;  %v2844_v41 = vpop.f32.mrf.mxu1 }
  0xf4   : > { %v613_v42 = vpop.f32.mrf.mxu0  ;;  %v2846_v43 = vpop.f32.mrf.mxu1 }
  0xf5   : > { %v630_v19 = vadd.f32 %v613_v42, %v508_v17 }
  0xf6   : > { %v2368_v44 = vpop.f32.mrf.mxu0  ;;  %v2380_v45 = vpop.f32.mrf.mxu1 }
  0xf7   : > { %v744_v42 = vadd.f32 %v2846_v43, %v630_v19 }
  0xf8   : > { %v822_v46 = vpop.f32.mrf.mxu0  ;;  %v936_v47 = vpop.f32.mrf.mxu1 }
  0xfa   : > { %v2369_v36 = vpop.f32.mrf.mxu0  ;;  %v2381_v48 = vpop.f32.mrf.mxu1 }
  0xfb   : > { %v856_v59 = vadd.f32 %v2369_v36, %v742_v11 }
  0xfc   : > { %v825_v49 = vpop.f32.mrf.mxu0  ;;  %v939_v50 = vpop.f32.mrf.mxu1 }
  0xfd   : > { %v970_v25 = vadd.f32 %v2381_v48, %v856_v59 }
  0xfe   : > { %v2372_v51 = vpop.f32.mrf.mxu0  ;;  %v2848_v52 = vpop.f32.mrf.mxu1 }
  0xff   : > { %3068 = vst [vmem:[#allocation2_spill] sm:$0xff] %v2848_v52  ;;  %v505_v52 = vadd.f32 %v504_v22, %v415_v21  ;;  %v854_v21 = vadd.f32 %v825_v49, %v740_v12  ;;  %v1420_v22 = vshrl.u32 %v1419_v14, 7 }
 0x100   : > { %v838_v53 = vpop.f32.mrf.mxu0  ;;  %v2850_v54 = vpop.f32.mrf.mxu1 }
 0x101   : > { %v629_v13 = vadd.f32 %v610_v38, %v505_v52  ;;  %v968_v26 = vadd.f32 %v939_v50, %v854_v21 }
 0x102   : > { %v2852_v55 = vpop.f32.mrf.mxu0  ;;  %v2854_v56 = vpop.f32.mrf.mxu1 }
 0x103   : > { %3069 = vst [vmem:[#allocation3_spill] sm:$0xff] %v2854_v56  ;;  %v743_v62 = vadd.f32 %v724_v39, %v629_v13 }
 0x104   : > { %v2856_v57 = vpop.f32.mrf.mxu0  ;;  %v2858_v58 = vpop.f32.mrf.mxu1 }
 0x105   : > { %3070 = vst [vmem:[#allocation4_spill] sm:$0xff] %v2856_v57  ;;  %3071 = vst [vmem:[#allocation5_spill] sm:$0xff] %v2858_v58  ;;  %v853_v58 = vadd.f32 %v822_v46, %v739_v7  ;;  %v741_v57 = vadd.f32 %v2356_v28, %v627_v4  ;;  %v632_v46 = vadd.f32 %v2349_v40, %v516_v16 }
 0x106   : > { %v2392_v60 = vpop.f32.mrf.mxu0  ;;  %v2860_v61 = vpop.f32.mrf.mxu1  ;;  %v857_v35 = vadd.f32 %v838_v53, %v743_v62  ;;  %v3074_v4 = vld [vmem:[#allocation2_spill] sm:$0xff] }
 0x107   : > { %3072 = vst [vmem:[#allocation6_spill] sm:$0xff] %v2860_v61  ;;  %v855_v27 = vadd.f32 %v2368_v44, %v741_v57  ;;  %v967_v33 = vadd.f32 %v936_v47, %v853_v58  ;;  %v1421_v44 = vsub.s32 0, %v1420_v22  ;;  %v746_v40 = vadd.f32 %v2844_v41, %v632_v46 }
 0x108   : > { %v1051_v0 = vpop.f32.mrf.mxu0  ;;  %v1165_v1 = vpop.f32.mrf.mxu1  ;;  %v859_v47 = vadd.f32 %v2372_v51, %v745_v32  ;;  %v971_v48 = vadd.f32 %v2850_v54, %v857_v35 }
 0x109   : > { %v1082_v63 = vadd.f32 %v1051_v0, %v967_v33  ;;  %v969_v34 = vadd.f32 %v2380_v45, %v855_v27  ;;  %v860_v58 = vadd.f32 %v2852_v55, %v746_v40 }
 0x10a   : > { %v2393_v5 = vpop.f32.mrf.mxu0  ;;  %v2405_v6 = vpop.f32.mrf.mxu1  ;;  %v973_v43 = vadd.f32 %v3074_v4, %v859_v47  ;;  %v1597_v47 = vld [vmem:[%s3066_s7 + $0x90] sm:$0xff] }
 0x10b   : > { %v1084_v39 = vadd.f32 %v2392_v60, %v969_v34  ;;  %v1196_v37 = vadd.f32 %v1165_v1, %v1082_v63  ;;  %v1085_v45 = vadd.f32 %v2393_v5, %v970_v25 }
 0x10c   : > { %v1054_v10 = vpop.f32.mrf.mxu0  ;;  %v1168_v56 = vpop.f32.mrf.mxu1  ;;  %v3073_v50 = vld [vmem:[#allocation4_spill] sm:$0xff]  ;;  %v3077_v12 = vld [vmem:[#allocation5_spill] sm:$0xff] }
 0x10d   : > { %v1083_v52 = vadd.f32 %v1054_v10, %v968_v26  ;;  %v858_v53 = vadd.f32 %v3073_v50, %v744_v42  ;;  %v1199_v8 = vadd.f32 %v2405_v6, %v1085_v45  ;;  %v3076_v10 = vld [vmem:[#allocation3_spill] sm:$0xff]  ;;  %v1579_v42 = vld [vmem:[%s3066_s7] sm:$0xff] }
 0x10e   : > { %v2396_v61 = vpop.f32.mrf.mxu0  ;;  %v2862_v29 = vpop.f32.mrf.mxu1  ;;  %v3075_v51 = vld [vmem:[#allocation6_spill] sm:$0xff]  ;;  %v974_v14 = vadd.f32 %v3076_v10, %v860_v58  ;;  %2469 = vmatprep.mubr.msk.f32.mxu0 %vm1611_vm2, %v1579_v42  ;;  %v1601_v10 = vld [vmem:[%s3066_s7 + $0xb0] sm:$0xff] }
 0x10f   : > { %v1198_v60 = vadd.f32 %v3075_v51, %v1084_v39  ;;  %v1197_v1 = vadd.f32 %v1168_v56, %v1083_v52  ;;  %v1088_v55 = vadd.f32 %v2396_v61, %v973_v43  ;;  %v972_v54 = vadd.f32 %v3077_v12, %v858_v53  ;;  %v1580_v51 = vld [vmem:[%s3066_s7 + $0x8] sm:$0xff]  ;;  %v1586_v12 = vld [vmem:[%s3066_s7 + $0x38] sm:$0xff] }
 0x110   : > { %v1067_v30 = vpop.f32.mrf.mxu0  ;;  %v1181_v31 = vpop.f32.mrf.mxu1 }
 0x111   : > { %v1086_v5 = vadd.f32 %v1067_v30, %v971_v48  ;;  %v1202_v56 = vadd.f32 %v2862_v29, %v1088_v55  ;;  %v1602_v55 = vld [vmem:[%s3066_s7 + $0xb8] sm:$0xff] }
 0x112   : > { %v2397_v20 = vpop.f32.mrf.mxu0  ;;  %v2409_v28 = vpop.f32.mrf.mxu1 }
 0x113   : > { %v1200_v33 = vadd.f32 %v1181_v31, %v1086_v5  ;;  %v1089_v59 = vadd.f32 %v2397_v20, %v974_v14  ;;  %v1600_v5 = vld [vmem:[%s3066_s7 + $0xa8] sm:$0xff] }
 0x114   : > { %v1070_v38 = vpop.f32.mrf.mxu0  ;;  %v1184_v23 = vpop.f32.mrf.mxu1  ;;  %v1584_v14 = vld [vmem:[%s3066_s7 + $0x28] sm:$0xff] }
 0x115   : > { %v1087_v21 = vadd.f32 %v1070_v38, %v972_v54  ;;  %v1203_v32 = vadd.f32 %v2409_v28, %v1089_v59  ;;  %v1604_v54 = vld [vmem:[%s3066_s7 + $0xc8] sm:$0xff]  ;;  %v1590_v59 = vld [vmem:[%s3066_s7 + $0x58] sm:$0xff] }
 0x116   : > { %v2416_v36 = vpop.f32.mrf.mxu0  ;;  %v1415_v49 = vpop.f32.mrf.mxu1 }
 0x117   : > { %v1416_v57 = vadd.f32 %v1415_v49, %v1345_v24  ;;  %v1312_v15 = vadd.f32 %v2416_v36, %v1198_v60  ;;  %v1201_v34 = vadd.f32 %v1184_v23, %v1087_v21  ;;  %v1598_v60 = vld [vmem:[%s3066_s7 + $0x98] sm:$0xff]  ;;  %v1608_v21 = vld [vmem:[%s3066_s7 + $0xe8] sm:$0xff] }
 0x118   : > { %v1279_v0 = vpop.f32.mrf.mxu0  ;;  %v2432_v2 = vpop.f32.mrf.mxu1 }
 0x119   : > { %v1422_v3 = vrot.slane %v1416_v57, %v1421_v44  ;;  %v1310_v41 = vadd.f32 %v1279_v0, %v1196_v37  ;;  %v2159_v57 = vld [vmem:[%s3065_s6] ss:$0 sm:$0xff] }
 0x11a   : > { %v2417_v7 = vpop.f32.mrf.mxu0 }
 0x11b   : > { %v1423_v9 = vadd.f32 %v1422_v3, %v1310_v41  ;;  %v1313_v16 = vadd.f32 %v2417_v7, %v1199_v8  ;;  %v1425_v27 = vadd.f32 %v1422_v3, %v1312_v15  ;;  %v1581_v7 = vld [vmem:[%s3066_s7 + $0x10] sm:$0xff]  ;;  %v1599_v8 = vld [vmem:[%s3066_s7 + $0xa0] sm:$0xff] }
 0x11c   : > { %v1282_v11 = vpop.f32.mrf.mxu0  ;;  %v1585_v15 = vld [vmem:[%s3066_s7 + $0x30] sm:$0xff] }
 0x11d   : > { %v1431_v13 = vmax.f32 %v1423_v9, 0.0  ;;  %v1311_v17 = vadd.f32 %v1282_v11, %v1197_v1  ;;  %v1426_v30 = vadd.f32 %v1422_v3, %v1313_v16  ;;  %v1433_v63 = vmax.f32 %v1425_v27, 0.0  ;;  %v1582_v1 = vld [vmem:[%s3066_s7 + $0x18] sm:$0xff]  ;;  %v1583_v9 = vld [vmem:[%s3066_s7 + $0x20] sm:$0xff]  ;;  %v1605_v16 = vld [vmem:[%s3066_s7 + $0xd0] sm:$0xff] }
 0x11e   : > { %v2420_v18 = vpop.f32.mrf.mxu0  ;;  %v1603_v11 = vld [vmem:[%s3066_s7 + $0xc0] sm:$0xff]  ;;  %v1589_v27 = vld [vmem:[%s3066_s7 + $0x50] sm:$0xff] }
 0x11f   : > { %v1424_v22 = vadd.f32 %v1422_v3, %v1311_v17  ;;  %2441 = vmatprep.mubr.msk.f32.mxu1 %vm352_vm0, %v1431_v13  ;;  %v1316_v19 = vadd.f32 %v2420_v18, %v1202_v56  ;;  %v1434_v20 = vmax.f32 %v1426_v30, 0.0  ;;  %v1587_v13 = vld [vmem:[%s3066_s7 + $0x40] sm:$0xff]  ;;  %v1588_v17 = vld [vmem:[%s3066_s7 + $0x48] sm:$0xff]  ;;  %v1606_v18 = vld [vmem:[%s3066_s7 + $0xd8] sm:$0xff] }
 0x120   : > { %v1295_v6 = vpop.f32.mrf.mxu0  ;;  %v1609_v56 = vld [vmem:[%s3066_s7 + $0xf0] sm:$0xff]  ;;  %v1610_v30 = vld [vmem:[%s3066_s7 + $0xf8] sm:$0xff] }
 0x121   : > { %v1432_v61 = vmax.f32 %v1424_v22, 0.0  ;;  %v1314_v46 = vadd.f32 %v1295_v6, %v1200_v33  ;;  %v1429_v29 = vadd.f32 %v1422_v3, %v1316_v19  ;;  %v1607_v33 = vld [vmem:[%s3066_s7 + $0xe0] sm:$0xff]  ;;  %v1592_v6 = vld [vmem:[%s3066_s7 + $0x68] sm:$0xff] }
 0x122   : > { %v2421_v62 = vpop.f32.mrf.mxu0  ;;  %v1591_v22 = vld [vmem:[%s3066_s7 + $0x60] sm:$0xff] }
 0x123   : > { %v1427_v24 = vadd.f32 %v1422_v3, %v1314_v46  ;;  %2442 = vmatmul.mubr.msk.f32.vlgmr.msra.gmra.mxu1 %vm352_vm0, %v1432_v61  ;;  %v1317_v25 = vadd.f32 %v2421_v62, %v1203_v32  ;;  %v1437_v28 = vmax.f32 %v1429_v29, 0.0  ;;  %v1593_v61 = vld [vmem:[%s3066_s7 + $0x70] sm:$0xff]  ;;  %v1594_v46 = vld [vmem:[%s3066_s7 + $0x78] sm:$0xff]  ;;  %v1595_v19 = vld [vmem:[%s3066_s7 + $0x80] sm:$0xff] }
 0x124   : > { %v1298_v31 = vpop.f32.mrf.mxu0  ;;  %2444 = vmatprep.mubr.msk.f32.mxu1 %vm352_vm0, %v1433_v63  ;;  %v1596_v62 = vld [vmem:[%s3066_s7 + $0x88] sm:$0xff] }
 0x125   : > { %v1435_v38 = vmax.f32 %v1427_v24, 0.0  ;;  %v1315_v26 = vadd.f32 %v1298_v31, %v1201_v34  ;;  %v1430_v44 = vadd.f32 %v1422_v3, %v1317_v25 }
 0x127   : > { %v1428_v35 = vadd.f32 %v1422_v3, %v1315_v26  ;;  %2445 = vmatmul.mubr.msk.f32.gmra.mxu1 %vm352_vm0, %v1434_v20  ;;  %v1438_v23 = vmax.f32 %v1430_v44, 0.0 }
 0x128   : > { %2447 = vmatprep.mubr.msk.f32.mxu1 %vm352_vm0, %v1435_v38 }
 0x129   : > { %v1436_v40 = vmax.f32 %v1428_v35, 0.0 }
 0x12b   : > { %2448 = vmatmul.mubr.msk.f32.gmra.mxu1 %vm352_vm0, %v1436_v40 }
 0x12c   : > { %2450 = vmatprep.mubr.msk.f32.mxu1 %vm352_vm0, %v1437_v28 }
 0x12f   : > { %2451 = vmatmul.mubr.msk.f32.gmra.mxu1 %vm352_vm0, %v1438_v23 }
 0x130   : > { %2496 = vmatprep.mubr.msk.f32.mxu1 %vm1611_vm2, %v1597_v47 }
 0x1e3   : > { %v2443_v39 = vpop.f32.mrf.mxu1 }
 0x1e4   : > { %v1546_v4 = vadd.f32 %v2443_v39, %v2159_v57 }
 0x1e5   : > { %v1540_v36 = vpop.f32.mrf.mxu1 }
 0x1e6   : > { %v1541_v43 = vadd.f32 %v2159_v57, %v1540_v36 }
 0x1e7   : > { %v2446_v49 = vpop.f32.mrf.mxu1 }
 0x1e8   : > { %v1556_v3 = vadd.f32 %v2446_v49, %v2159_v57 }
 0x1e9   : > { %v1550_v37 = vpop.f32.mrf.mxu1 }
 0x1ea   : > { %v1551_v41 = vadd.f32 %v2159_v57, %v1550_v37 }
 0x1eb   : > { %v2449_v45 = vpop.f32.mrf.mxu1 }
 0x1ec   : > { %v1566_v50 = vadd.f32 %v2449_v45, %v2159_v57 }
 0x1ed   : > { %v1560_v52 = vpop.f32.mrf.mxu1 }
 0x1ee   : > { %v1561_v53 = vadd.f32 %v2159_v57, %v1560_v52 }
 0x1ef   : > { %v2452_v58 = vpop.f32.mrf.mxu1 }
 0x1f0   : > { %v1576_v0 = vadd.f32 %v2452_v58, %v2159_v57 }
 0x1f1   : > { %v1570_v2 = vpop.f32.mrf.mxu1 }
 0x1f2   : > { %v1571_v48 = vadd.f32 %v2159_v57, %v1570_v2  ;;  %2453 = vmatprep.subr.mxu0 %v1576_v0  ;;  %2517 = vmatprep.subr.mxu1 %v1576_v0 }
 0x1f3   : > { %2454 = vmatpush3.msra.mxu0 %v1576_v0  ;;  %2525 = vmatpush3.msra.mxu1 %v1576_v0 }
 0x1f4   : > { %2455 = vmatprep.subr.mxu0 %v1571_v48  ;;  %2518 = vmatprep.subr.mxu1 %v1571_v48 }
 0x1f5   : > { %2456 = vmatpush3.msra.mxu0 %v1571_v48  ;;  %2526 = vmatpush3.msra.mxu1 %v1571_v48 }
 0x1f6   : > { %2457 = vmatprep.subr.mxu0 %v1566_v50  ;;  %2519 = vmatprep.subr.mxu1 %v1566_v50 }
 0x1f7   : > { %2458 = vmatpush3.msra.mxu0 %v1566_v50  ;;  %2527 = vmatpush3.msra.mxu1 %v1566_v50 }
 0x1f8   : > { %2459 = vmatprep.subr.mxu0 %v1561_v53  ;;  %2520 = vmatprep.subr.mxu1 %v1561_v53 }
 0x1f9   : > { %2460 = vmatpush3.msra.mxu0 %v1561_v53  ;;  %2528 = vmatpush3.msra.mxu1 %v1561_v53 }
 0x1fa   : > { %2461 = vmatprep.subr.mxu0 %v1556_v3  ;;  %2521 = vmatprep.subr.mxu1 %v1556_v3 }
 0x1fb   : > { %2462 = vmatpush3.msra.mxu0 %v1556_v3  ;;  %2529 = vmatpush3.msra.mxu1 %v1556_v3 }
 0x1fc   : > { %2463 = vmatprep.subr.mxu0 %v1551_v41  ;;  %2522 = vmatprep.subr.mxu1 %v1551_v41 }
 0x1fd   : > { %2464 = vmatpush3.msra.mxu0 %v1551_v41  ;;  %2530 = vmatpush3.msra.mxu1 %v1551_v41 }
 0x1fe   : > { %2465 = vmatprep.subr.mxu0 %v1546_v4  ;;  %2523 = vmatprep.subr.mxu1 %v1546_v4 }
 0x1ff   : > { %2466 = vmatpush3.msra.mxu0 %v1546_v4  ;;  %2531 = vmatpush3.msra.mxu1 %v1546_v4 }
 0x200   : > { %2467 = vmatprep.subr.mxu0 %v1541_v43  ;;  %2524 = vmatprep.subr.mxu1 %v1541_v43 }
 0x201   : > { %2468 = vmatpush3.msra.mxu0 %v1541_v43  ;;  %2532 = vmatpush3.msra.mxu1 %v1541_v43 }
 0x202   : > { %2470 = vmatmul.mubr.msk.f32.vlgmr.msra.gmra.mxu0 %vm1611_vm2, %v1580_v51  ;;  %2497 = vmatmul.mubr.msk.f32.vlgmr.msra.gmra.mxu1 %vm1611_vm2, %v1598_v60 }
 0x203   : > { %2472 = vmatprep.mubr.msk.f32.mxu0 %vm1611_vm2, %v1581_v7  ;;  %2499 = vmatprep.mubr.msk.f32.mxu1 %vm1611_vm2, %v1599_v8 }
 0x206   : > { %2473 = vmatmul.mubr.msk.f32.gmra.mxu0 %vm1611_vm2, %v1582_v1  ;;  %2500 = vmatmul.mubr.msk.f32.gmra.mxu1 %vm1611_vm2, %v1600_v5 }
 0x207   : > { %2475 = vmatprep.mubr.msk.f32.mxu0 %vm1611_vm2, %v1583_v9  ;;  %2502 = vmatprep.mubr.msk.f32.mxu1 %vm1611_vm2, %v1601_v10 }
 0x20a   : > { %2476 = vmatmul.mubr.msk.f32.gmra.mxu0 %vm1611_vm2, %v1584_v14  ;;  %2503 = vmatmul.mubr.msk.f32.gmra.mxu1 %vm1611_vm2, %v1602_v55 }
 0x20b   : > { %2478 = vmatprep.mubr.msk.f32.mxu0 %vm1611_vm2, %v1585_v15  ;;  %2505 = vmatprep.mubr.msk.f32.mxu1 %vm1611_vm2, %v1603_v11 }
 0x20e   : > { %2479 = vmatmul.mubr.msk.f32.gmra.mxu0 %vm1611_vm2, %v1586_v12  ;;  %2506 = vmatmul.mubr.msk.f32.gmra.mxu1 %vm1611_vm2, %v1604_v54 }
 0x20f   : > { %2481 = vmatprep.mubr.msk.f32.mxu0 %vm1611_vm2, %v1587_v13  ;;  %2508 = vmatprep.mubr.msk.f32.mxu1 %vm1611_vm2, %v1605_v16 }
 0x212   : > { %2482 = vmatmul.mubr.msk.f32.gmra.mxu0 %vm1611_vm2, %v1588_v17  ;;  %2509 = vmatmul.mubr.msk.f32.gmra.mxu1 %vm1611_vm2, %v1606_v18 }
 0x213   : > { %2484 = vmatprep.mubr.msk.f32.mxu0 %vm1611_vm2, %v1589_v27  ;;  %2511 = vmatprep.mubr.msk.f32.mxu1 %vm1611_vm2, %v1607_v33 }
 0x216   : > { %2485 = vmatmul.mubr.msk.f32.gmra.mxu0 %vm1611_vm2, %v1590_v59  ;;  %2512 = vmatmul.mubr.msk.f32.gmra.mxu1 %vm1611_vm2, %v1608_v21 }
 0x217   : > { %2487 = vmatprep.mubr.msk.f32.mxu0 %vm1611_vm2, %v1591_v22  ;;  %2514 = vmatprep.mubr.msk.f32.mxu1 %vm1611_vm2, %v1609_v56 }
 0x21a   : > { %2488 = vmatmul.mubr.msk.f32.gmra.mxu0 %vm1611_vm2, %v1592_v6  ;;  %2515 = vmatmul.mubr.msk.f32.gmra.mxu1 %vm1611_vm2, %v1610_v30 }
 0x21b   : > { %2490 = vmatprep.mubr.msk.f32.mxu0 %vm1611_vm2, %v1593_v61 }
 0x21e   : > { %2491 = vmatmul.mubr.msk.f32.gmra.mxu0 %vm1611_vm2, %v1594_v46 }
 0x21f   : > { %2493 = vmatprep.mubr.msk.f32.mxu0 %vm1611_vm2, %v1595_v19 }
 0x222   : > { %2494 = vmatmul.mubr.msk.f32.gmra.mxu0 %vm1611_vm2, %v1596_v62 }
 0x2c2   : > { %v2471_v63 = vpop.f32.mrf.mxu0  ;;  %v2498_v32 = vpop.f32.mrf.mxu1 }
 0x2c3   : > { %1934 = vst [vmem:[%s3022_s15 + $0x8] sm:$0xff] %v2471_v63  ;;  %1952 = vst [vmem:[%s3022_s15 + $0x98] sm:$0xff] %v2498_v32 }
 0x2c4   : > { %v1774_v34 = vpop.f32.mrf.mxu0  ;;  %v1864_v24 = vpop.f32.mrf.mxu1 }
 0x2c5   : > { %1933 = vst [vmem:[%s3022_s15] sm:$0xff] %v1774_v34  ;;  %1951 = vst [vmem:[%s3022_s15 + $0x90] sm:$0xff] %v1864_v24 }
 0x2c6   : > { %v2474_v31 = vpop.f32.mrf.mxu0  ;;  %v2501_v20 = vpop.f32.mrf.mxu1 }
 0x2c7   : > { %1936 = vst [vmem:[%s3022_s15 + $0x18] sm:$0xff] %v2474_v31  ;;  %1954 = vst [vmem:[%s3022_s15 + $0xa8] sm:$0xff] %v2501_v20 }
 0x2c8   : > { %v1784_v38 = vpop.f32.mrf.mxu0  ;;  %v1874_v25 = vpop.f32.mrf.mxu1 }
 0x2c9   : > { %1935 = vst [vmem:[%s3022_s15 + $0x10] sm:$0xff] %v1784_v38  ;;  %1953 = vst [vmem:[%s3022_s15 + $0xa0] sm:$0xff] %v1874_v25 }
 0x2ca   : > { %v2477_v26 = vpop.f32.mrf.mxu0  ;;  %v2504_v29 = vpop.f32.mrf.mxu1 }
 0x2cb   : > { %1938 = vst [vmem:[%s3022_s15 + $0x28] sm:$0xff] %v2477_v26  ;;  %1956 = vst [vmem:[%s3022_s15 + $0xb8] sm:$0xff] %v2504_v29 }
 0x2cc   : > { %v1794_v35 = vpop.f32.mrf.mxu0  ;;  %v1884_v44 = vpop.f32.mrf.mxu1 }
 0x2cd   : > { %1937 = vst [vmem:[%s3022_s15 + $0x20] sm:$0xff] %v1794_v35  ;;  %1955 = vst [vmem:[%s3022_s15 + $0xb0] sm:$0xff] %v1884_v44 }
 0x2ce   : > { %v2480_v40 = vpop.f32.mrf.mxu0  ;;  %v2507_v28 = vpop.f32.mrf.mxu1 }
 0x2cf   : > { %1940 = vst [vmem:[%s3022_s15 + $0x38] sm:$0xff] %v2480_v40  ;;  %1958 = vst [vmem:[%s3022_s15 + $0xc8] sm:$0xff] %v2507_v28 }
 0x2d0   : > { %v1804_v23 = vpop.f32.mrf.mxu0  ;;  %v1894_v42 = vpop.f32.mrf.mxu1 }
 0x2d1   : > { %1939 = vst [vmem:[%s3022_s15 + $0x30] sm:$0xff] %v1804_v23  ;;  %1957 = vst [vmem:[%s3022_s15 + $0xc0] sm:$0xff] %v1894_v42 }
 0x2d2   : > { %v2483_v47 = vpop.f32.mrf.mxu0  ;;  %v2510_v39 = vpop.f32.mrf.mxu1 }
 0x2d3   : > { %1942 = vst [vmem:[%s3022_s15 + $0x48] sm:$0xff] %v2483_v47  ;;  %1960 = vst [vmem:[%s3022_s15 + $0xd8] sm:$0xff] %v2510_v39 }
 0x2d4   : > { %v1814_v36 = vpop.f32.mrf.mxu0  ;;  %v1904_v49 = vpop.f32.mrf.mxu1 }
 0x2d5   : > { %1941 = vst [vmem:[%s3022_s15 + $0x40] sm:$0xff] %v1814_v36  ;;  %1959 = vst [vmem:[%s3022_s15 + $0xd0] sm:$0xff] %v1904_v49 }
 0x2d6   : > { %v2486_v37 = vpop.f32.mrf.mxu0  ;;  %v2513_v45 = vpop.f32.mrf.mxu1 }
 0x2d7   : > { %1944 = vst [vmem:[%s3022_s15 + $0x58] sm:$0xff] %v2486_v37  ;;  %1962 = vst [vmem:[%s3022_s15 + $0xe8] sm:$0xff] %v2513_v45 }
 0x2d8   : > { %v1824_v52 = vpop.f32.mrf.mxu0  ;;  %v1914_v57 = vpop.f32.mrf.mxu1 }
 0x2d9   : > { %1943 = vst [vmem:[%s3022_s15 + $0x50] sm:$0xff] %v1824_v52  ;;  %1961 = vst [vmem:[%s3022_s15 + $0xe0] sm:$0xff] %v1914_v57 }
 0x2da   : > { %v2489_v58 = vpop.f32.mrf.mxu0  ;;  %v2516_v0 = vpop.f32.mrf.mxu1 }
 0x2db   : > { %1946 = vst [vmem:[%s3022_s15 + $0x68] sm:$0xff] %v2489_v58  ;;  %1964 = vst [vmem:[%s3022_s15 + $0xf8] sm:$0xff] %v2516_v0 }
 0x2dc   : > { %v1834_v2 = vpop.f32.mrf.mxu0  ;;  %v1924_v48 = vpop.f32.mrf.mxu1 }
 0x2dd   : > { %1945 = vst [vmem:[%s3022_s15 + $0x60] sm:$0xff] %v1834_v2  ;;  %1963 = vst [vmem:[%s3022_s15 + $0xf0] sm:$0xff] %v1924_v48 }
 0x2de   : > { %v2492_v50 = vpop.f32.mrf.mxu0 }
 0x2df   : > { %1948 = vst [vmem:[%s3022_s15 + $0x78] sm:$0xff] %v2492_v50 }
 0x2e0   : > { %v1844_v53 = vpop.f32.mrf.mxu0 }
 0x2e1   : > { %1947 = vst [vmem:[%s3022_s15 + $0x70] sm:$0xff] %v1844_v53 }
 0x2e2   : > { %v2495_v3 = vpop.f32.mrf.mxu0 }
 0x2e3   : > { %1950 = vst [vmem:[%s3022_s15 + $0x88] sm:$0xff] %v2495_v3 }
 0x2e4   : > { %v1854_v41 = vpop.f32.mrf.mxu0 }
 0x2e5   : > { %1949 = vst [vmem:[%s3022_s15 + $0x80] sm:$0xff] %v1854_v41 }
 0x2e6 PF: > { %s18_s27 = sadd.s32 1, %s2568_s27  }
 0x2e7   : > { %p15_p4 = scmp.ge.s32.totalorder %s18_s27, 4  }
 0x2e9   :  { %17 = sbr.rel (!%p15_p4) target bundleno = 1 (0x1), region = 91 }

</bundles_post_ra>
